<compile_context>
chip_gen: v7x
topology: tpu7x:2x2x1
jax: 0.10.0
libtpu: 0.0.40
codegen_flags: <defaults>
</compile_context>

<pallas_src>
import functools

import jax
import jax.numpy as jnp
from jax.experimental import pallas as pl
from jax.experimental.pallas import tpu as pltpu


def _height_regression_kernel(x_ref, w1_ref, g1_ref, be1_ref, wr8_ref, br_ref,
                              o_ref,
                              sum_ref, sq_ref, pilot_ref, scale_ref, shift_ref,
                              hcache_ref,
                              *, n_total, n_pad_rows, tile, eps, use_cache):
    p = pl.program_id(0)   # phase: 0 = accumulate BN stats, 1 = normalize + regress
    i = pl.program_id(1)   # batch tile

    @pl.when(p == 0)
    def _phase0():
        # fc1 on the MXU, f32 in / f32 accumulate.  The fc1 bias is intentionally
        # omitted: training-mode BatchNorm subtracts the batch mean right after, so the
        # bias cancels exactly (this also makes zero-padded rows give h == 0 exactly).
        h = jnp.dot(x_ref[...], w1_ref[...], preferred_element_type=jnp.float32)
        if use_cache:
            hcache_ref[pl.ds(pl.multiple_of(i * tile, tile), tile), :] = h

        # MXU lhs used for the column reductions (keeps them off the VPU/XLU slots).
        ones = jnp.ones((8, tile), jnp.float32)

        @pl.when(i == 0)
        def _init():
            sum_ref[...] = jnp.zeros_like(sum_ref)
            sq_ref[...] = jnp.zeros_like(sq_ref)
            # Pilot mean (first tile's column mean): shifting by it keeps the running
            # sum-of-squares small, avoiding E[h^2] - E[h]^2 cancellation.
            s0 = jax.lax.dot_general(ones, h, (((1,), (0,)), ((), ())),
                                     preferred_element_type=jnp.float32)
            pilot_ref[...] = s0[0:1, :] * jnp.float32(1.0 / tile)

        hs = h - pilot_ref[...]
        s = jax.lax.dot_general(ones, hs, (((1,), (0,)), ((), ())),
                                preferred_element_type=jnp.float32)
        q = jax.lax.dot_general(ones, hs * hs, (((1,), (0,)), ((), ())),
                                preferred_element_type=jnp.float32)
        sum_ref[...] += s[0:1, :]
        sq_ref[...] += q[0:1, :]

    @pl.when(p == 1)
    def _phase1():
        @pl.when(i == 0)
        def _finalize_stats():
            pilot = pilot_ref[...]
            s = sum_ref[...]
            q = sq_ref[...]
            if n_pad_rows:
                # Zero-padded rows (h == 0) contributed exactly (-pilot) to the sum and
                # pilot^2 to the sum-of-squares; remove them so the statistics cover the
                # true batch only (divide by the true N below).
                s = s + jnp.float32(n_pad_rows) * pilot
                q = q - jnp.float32(n_pad_rows) * pilot * pilot
            inv_n = jnp.float32(1.0 / n_total)
            d = s * inv_n                                  # E[h] - pilot
            var = q * inv_n - d * d                        # biased variance (torch BN)
            scale = g1_ref[...] * jax.lax.rsqrt(var + jnp.float32(eps))
            scale_ref[...] = scale
            shift_ref[...] = be1_ref[...] - (pilot + d) * scale

        if use_cache:
            h = hcache_ref[pl.ds(pl.multiple_of(i * tile, tile), tile), :]
        else:
            # Large-N fallback: re-read the x tile and re-run fc1.
            h = jnp.dot(x_ref[...], w1_ref[...], preferred_element_type=jnp.float32)

        a = jnp.maximum(h * scale_ref[...] + shift_ref[...], 0.0)   # BN + ReLU, [T, H]
        # reg layer as w_row @ a^T so the per-tile result is a lane-dense [*, tile] row
        # (dense stores, contiguous writeback); the wrapper reshapes to (N, 1).
        y8 = jax.lax.dot_general(wr8_ref[...], a, (((1,), (1,)), ((), ())),
                                 preferred_element_type=jnp.float32)   # [8, tile]
        o_ref[...] = jnp.maximum(y8[0:1, :] + br_ref[...], 0.0)       # [1, tile]


def _pick_tile(n):
    # Prefer large, lane/sublane-friendly tiles; padding in the wrapper handles ragged N.
    for t in (8192, 4096, 2048, 1024, 512, 256, 128):
        if n >= t:
            return t
    return 128


def height_regression(x, w1, b1, gamma1, beta1, w_reg, b_reg, *,
                      eps=1e-5, block_n=None, use_cache=None):
    # b1 is accepted for API parity with the PyTorch module but is not passed to the
    # kernel: training-mode BatchNorm's mean subtraction cancels it exactly.
    del b1
    x = jnp.asarray(x, jnp.float32)
    N, D = x.shape
    H = w1.shape[1]
    w_reg2 = jnp.asarray(w_reg, jnp.float32).reshape(H, -1)
    assert w_reg2.shape[1] == 1, "kernel implements output_size=1"

    if block_n is None:
        tile = _pick_tile(N)
    else:
        tile = max(128, ((int(block_n) + 127) // 128) * 128)   # lane-dense output tiles

    n_pad_rows = (-N) % tile
    N_pad = N + n_pad_rows
    nt = N_pad // tile
    if n_pad_rows:
        # Zero rows -> h == 0 exactly (no fc1 bias in-kernel); corrected out of the
        # BN statistics inside the kernel.
        x = jnp.pad(x, ((0, n_pad_rows), (0, 0)))

    # --- VMEM budgeting (conservative: v7x has 64 MiB per TensorCore) -------------
    f32 = 4
    base_vmem = (2 * tile * D * f32          # x double buffer
                 + 2 * D * H * f32           # w1 (counted double-buffered)
                 + 2 * tile * f32            # (1, tile) output double buffer
                 + 6 * 8 * 128 * f32         # padded small scratch
                 + (2 << 20))                # margin
    cache_bytes = N_pad * H * f32
    if use_cache is None:
        use_cache = (base_vmem + cache_bytes) <= (48 << 20)
    hcache_rows = N_pad if use_cache else 8
    vmem_limit = max(base_vmem + hcache_rows * H * f32 + (2 << 20), 16 << 20)

    g = jnp.asarray(gamma1, jnp.float32).reshape(1, H)
    be = jnp.asarray(beta1, jnp.float32).reshape(1, H)
    wr8 = jnp.broadcast_to(w_reg2.reshape(1, H), (8, H)).astype(jnp.float32)
    br = jnp.asarray(b_reg, jnp.float32).reshape(1, 1)

    if use_cache:
        # Pin the x block index during phase 1 (h comes from the VMEM cache), so no x
        # DMA is issued in that phase at all.
        x_map = lambda p, i: ((1 - p) * i + p * (nt - 1), 0)
    else:
        x_map = lambda p, i: (i, 0)

    kernel = functools.partial(
        _height_regression_kernel, n_total=N, n_pad_rows=n_pad_rows,
        tile=tile, eps=float(eps), use_cache=bool(use_cache))

    out_row = pl.pallas_call(
        kernel,
        out_shape=jax.ShapeDtypeStruct((1, N_pad), jnp.float32),
        grid_spec=pltpu.PrefetchScalarGridSpec(
            num_scalar_prefetch=0,
            grid=(2, nt),                                      # (phase, batch tile)
            in_specs=[
                pl.BlockSpec((tile, D), x_map),                # x tile    (f32)
                pl.BlockSpec((D, H), lambda p, i: (0, 0)),     # w1        (resident)
                pl.BlockSpec((1, H), lambda p, i: (0, 0)),     # gamma     (resident)
                pl.BlockSpec((1, H), lambda p, i: (0, 0)),     # beta      (resident)
                pl.BlockSpec((8, H), lambda p, i: (0, 0)),     # w_reg x8  (resident)
                pl.BlockSpec((1, 1), lambda p, i: (0, 0)),     # b_reg     (resident)
            ],
            # Phase 0 pins the output block index (nothing written back to HBM);
            # phase 1 emits one lane-dense [1, tile] row per batch tile.
            out_specs=pl.BlockSpec((1, tile), lambda p, i: (0, i * p)),
            scratch_shapes=[
                pltpu.VMEM((1, H), jnp.float32),            # running sum(h - pilot)
                pltpu.VMEM((1, H), jnp.float32),            # running sum((h - pilot)^2)
                pltpu.VMEM((1, H), jnp.float32),            # pilot mean
                pltpu.VMEM((1, H), jnp.float32),            # folded BN scale
                pltpu.VMEM((1, H), jnp.float32),            # folded BN shift
                pltpu.VMEM((hcache_rows, H), jnp.float32),  # h cache (or tiny dummy)
            ],
        ),
        compiler_params=pltpu.CompilerParams(
            # Both axes stay sequential: batch tiles share the BN-stat scratch and
            # phase 1 depends on all of phase 0 (see v7x TODO at top of file).
            dimension_semantics=("arbitrary", "arbitrary"),
            vmem_limit_bytes=int(vmem_limit),
        ),
    )(x, jnp.asarray(w1, jnp.float32), g, be, wr8, br)

    return out_row[0, :N].reshape(N, 1)


if __name__ == "__main__":
    # Module defaults: input_size=128, hidden_size=64, layer_num=1, output_size=1.
    # N=200 with block_n=128 exercises two batch tiles AND the ragged-N padding path.
    N, D, H, O = 200, 128, 64, 1

    key = jax.random.PRNGKey(0)
    kx, kw1, kb1, kwr, kbr = jax.random.split(key, 5)

    x = jax.random.normal(kx, (N, D), dtype=jnp.float32)
    w1 = jax.random.uniform(kw1, (D, H), jnp.float32, -1.0, 1.0) / jnp.sqrt(D)
    b1 = jax.random.uniform(kb1, (1, H), jnp.float32, -1.0, 1.0) / jnp.sqrt(D)
    gamma1 = jnp.ones((1, H), jnp.float32)     # BatchNorm1d default weight
    beta1 = jnp.zeros((1, H), jnp.float32)     # BatchNorm1d default bias
    w_reg = jax.random.uniform(kwr, (H, O), jnp.float32, -1.0, 1.0) / jnp.sqrt(H)
    b_reg = jax.random.uniform(kbr, (1, O), jnp.float32, -1.0, 1.0) / jnp.sqrt(H)

    # Pure-f32 reference (includes the fc1 bias, which training-mode BN cancels —
    # demonstrating the kernel's bias omission preserves semantics).
    hp = jax.lax.Precision.HIGHEST
    h_ref = jnp.dot(x, w1, precision=hp) + b1
    m = h_ref.mean(axis=0, keepdims=True)
    v = ((h_ref - m) ** 2).mean(axis=0, keepdims=True)
    h_ref = jnp.maximum((h_ref - m) * jax.lax.rsqrt(v + 1e-5) * gamma1 + beta1, 0.0)
    y_ref = jnp.maximum(jnp.dot(h_ref, w_reg, precision=hp) + b_reg, 0.0)

    # Run both compiled paths: the VMEM h-cache path and the large-N re-read fallback.
    for cache in (True, False):
        out = jax.block_until_ready(
            height_regression(x, w1, b1, gamma1, beta1, w_reg, b_reg,
                              block_n=128, use_cache=cache))
        assert out.shape == (N, O)
        err = float(jnp.max(jnp.abs(out - y_ref)))
        assert jnp.allclose(out, y_ref, atol=5e-3, rtol=5e-3), \
            f"use_cache={cache}: max abs err {err}"

    print("KERNEL_OK")
</pallas_src>

<mosaic_0001>
module attributes {stable_mosaic.version = 11 : i64} {
  func.func @_height_regression_kernel(%arg0: i32, %arg1: i32, %arg2: memref<128x128xf32, #tpu.memory_space<vmem>>, %arg3: memref<128x64xf32, #tpu.memory_space<vmem>>, %arg4: memref<1x64xf32, #tpu.memory_space<vmem>>, %arg5: memref<1x64xf32, #tpu.memory_space<vmem>>, %arg6: memref<8x64xf32, #tpu.memory_space<vmem>>, %arg7: memref<1x1xf32, #tpu.memory_space<vmem>>, %arg8: memref<1x128xf32, #tpu.memory_space<vmem>>, %arg9: memref<1x64xf32, #tpu.memory_space<vmem>>, %arg10: memref<1x64xf32, #tpu.memory_space<vmem>>, %arg11: memref<1x64xf32, #tpu.memory_space<vmem>>, %arg12: memref<1x64xf32, #tpu.memory_space<vmem>>, %arg13: memref<1x64xf32, #tpu.memory_space<vmem>>, %arg14: memref<256x64xf32, #tpu.memory_space<vmem>>) attributes {dimension_semantics = [#tpu.dimension_semantics<arbitrary>, #tpu.dimension_semantics<arbitrary>], iteration_bounds = array<i64: 2, 2>, scalar_prefetch = 0 : i64, scratch_operands = 6 : i64, tpu.core_type = #tpu.core_type<tc>, window_params = [{transform_indices = @transform_0, window_bounds = array<i64: 128, 128>}, {pipeline_mode = #tpu.pipeline_mode<synchronous>, transform_indices = @transform_1, window_bounds = array<i64: 128, 64>}, {pipeline_mode = #tpu.pipeline_mode<synchronous>, transform_indices = @transform_2, window_bounds = array<i64: 1, 64>}, {pipeline_mode = #tpu.pipeline_mode<synchronous>, transform_indices = @transform_3, window_bounds = array<i64: 1, 64>}, {pipeline_mode = #tpu.pipeline_mode<synchronous>, transform_indices = @transform_4, window_bounds = array<i64: 8, 64>}, {pipeline_mode = #tpu.pipeline_mode<synchronous>, transform_indices = @transform_5, window_bounds = array<i64: 1, 1>}, {transform_indices = @transform_6, window_bounds = array<i64: 1, 128>}]} {
    %c0_i32 = arith.constant 0 : i32
    %0 = arith.cmpi eq, %arg0, %c0_i32 : i32
    %1 = arith.extui %0 : i1 to i32
    %c0_i32_0 = arith.constant 0 : i32
    %2 = arith.cmpi ne, %1, %c0_i32_0 : i32
    scf.if %2 {
      %c0 = arith.constant 0 : index
      %c0_2 = arith.constant 0 : index
      %6 = vector.load %arg2[%c0, %c0_2] : memref<128x128xf32, #tpu.memory_space<vmem>>, vector<128x128xf32>
      %c0_3 = arith.constant 0 : index
      %c0_4 = arith.constant 0 : index
      %7 = vector.load %arg3[%c0_3, %c0_4] : memref<128x64xf32, #tpu.memory_space<vmem>>, vector<128x64xf32>
      %cst = arith.constant dense<0.000000e+00> : vector<128x64xf32>
      %8 = tpu.matmul %6, %7, %cst {dimension_numbers = #tpu.dot_dimension_numbers<[1], [0], [0], [1], [0, 0, 1, 1], [], []>} : vector<128x128xf32>, vector<128x64xf32>, vector<128x64xf32> -> vector<128x64xf32>
      %c128_i32 = arith.constant 128 : i32
      %9 = arith.muli %arg1, %c128_i32 : i32
      %10 = tpu.assume_multiple %9, 128 : i32
      %11 = arith.index_cast %10 : i32 to index
      %c0_5 = arith.constant 0 : index
      %12 = vector.load %arg14[%11, %c0_5] : memref<256x64xf32, #tpu.memory_space<vmem>>, vector<128x64xf32>
      tpu.vector_store %arg14[%11, %c0_5], %8 {strides = array<i32>} : memref<256x64xf32, #tpu.memory_space<vmem>>, vector<128x64xf32>,
      %cst_6 = arith.constant 1.000000e+00 : f32
      %13 = vector.broadcast %cst_6 : f32 to vector<8x128xf32>
      %c0_i32_7 = arith.constant 0 : i32
      %14 = arith.cmpi eq, %arg1, %c0_i32_7 : i32
      %15 = arith.extui %14 : i1 to i32
      %c0_i32_8 = arith.constant 0 : i32
      %16 = arith.cmpi ne, %15, %c0_i32_8 : i32
      scf.if %16 {
        %cst_21 = arith.constant 0.000000e+00 : f32
        %31 = vector.broadcast %cst_21 : f32 to vector<1x64xf32>
        %c0_22 = arith.constant 0 : index
        %c0_23 = arith.constant 0 : index
        %32 = vector.load %arg9[%c0_22, %c0_23] : memref<1x64xf32, #tpu.memory_space<vmem>>, vector<1x64xf32>
        tpu.vector_store %arg9[%c0_22, %c0_23], %31 {strides = array<i32>} : memref<1x64xf32, #tpu.memory_space<vmem>>, vector<1x64xf32>,
        %cst_24 = arith.constant 0.000000e+00 : f32
        %33 = vector.broadcast %cst_24 : f32 to vector<1x64xf32>
        %c0_25 = arith.constant 0 : index
        %c0_26 = arith.constant 0 : index
        %34 = vector.load %arg10[%c0_25, %c0_26] : memref<1x64xf32, #tpu.memory_space<vmem>>, vector<1x64xf32>
        tpu.vector_store %arg10[%c0_25, %c0_26], %33 {strides = array<i32>} : memref<1x64xf32, #tpu.memory_space<vmem>>, vector<1x64xf32>,
        %cst_27 = arith.constant dense<0.000000e+00> : vector<8x64xf32>
        %35 = tpu.matmul %13, %8, %cst_27 {dimension_numbers = #tpu.dot_dimension_numbers<[1], [0], [0], [1], [0, 0, 1, 1], [], []>} : vector<8x128xf32>, vector<128x64xf32>, vector<8x64xf32> -> vector<8x64xf32>
        %36 = vector.extract_strided_slice %35 {offsets = [0, 0], sizes = [1, 64], strides = [1, 1]} : vector<8x64xf32> to vector<1x64xf32>
        %cst_28 = arith.constant 7.812500e-03 : f32
        %37 = vector.broadcast %cst_28 : f32 to vector<1x64xf32>
        %38 = arith.mulf %36, %37 : vector<1x64xf32>
        %c0_29 = arith.constant 0 : index
        %c0_30 = arith.constant 0 : index
        %39 = vector.load %arg11[%c0_29, %c0_30] : memref<1x64xf32, #tpu.memory_space<vmem>>, vector<1x64xf32>
        tpu.vector_store %arg11[%c0_29, %c0_30], %38 {strides = array<i32>} : memref<1x64xf32, #tpu.memory_space<vmem>>, vector<1x64xf32>,
      } else {
      }
      %c0_9 = arith.constant 0 : index
      %c0_10 = arith.constant 0 : index
      %17 = vector.load %arg11[%c0_9, %c0_10] : memref<1x64xf32, #tpu.memory_space<vmem>>, vector<1x64xf32>
      %18 = vector.broadcast %17 : vector<1x64xf32> to vector<128x64xf32>
      %19 = arith.subf %8, %18 : vector<128x64xf32>
      %cst_11 = arith.constant dense<0.000000e+00> : vector<8x64xf32>
      %20 = tpu.matmul %13, %19, %cst_11 {dimension_numbers = #tpu.dot_dimension_numbers<[1], [0], [0], [1], [0, 0, 1, 1], [], []>} : vector<8x128xf32>, vector<128x64xf32>, vector<8x64xf32> -> vector<8x64xf32>
      %21 = arith.mulf %19, %19 : vector<128x64xf32>
      %cst_12 = arith.constant dense<0.000000e+00> : vector<8x64xf32>
      %22 = tpu.matmul %13, %21, %cst_12 {dimension_numbers = #tpu.dot_dimension_numbers<[1], [0], [0], [1], [0, 0, 1, 1], [], []>} : vector<8x128xf32>, vector<128x64xf32>, vector<8x64xf32> -> vector<8x64xf32>
      %c0_13 = arith.constant 0 : index
      %c0_14 = arith.constant 0 : index
      %23 = vector.load %arg9[%c0_13, %c0_14] : memref<1x64xf32, #tpu.memory_space<vmem>>, vector<1x64xf32>
      %24 = vector.extract_strided_slice %20 {offsets = [0, 0], sizes = [1, 64], strides = [1, 1]} : vector<8x64xf32> to vector<1x64xf32>
      %25 = arith.addf %23, %24 : vector<1x64xf32>
      %c0_15 = arith.constant 0 : index
      %c0_16 = arith.constant 0 : index
      %26 = vector.load %arg9[%c0_15, %c0_16] : memref<1x64xf32, #tpu.memory_space<vmem>>, vector<1x64xf32>
      tpu.vector_store %arg9[%c0_15, %c0_16], %25 {strides = array<i32>} : memref<1x64xf32, #tpu.memory_space<vmem>>, vector<1x64xf32>,
      %c0_17 = arith.constant 0 : index
      %c0_18 = arith.constant 0 : index
      %27 = vector.load %arg10[%c0_17, %c0_18] : memref<1x64xf32, #tpu.memory_space<vmem>>, vector<1x64xf32>
      %28 = vector.extract_strided_slice %22 {offsets = [0, 0], sizes = [1, 64], strides = [1, 1]} : vector<8x64xf32> to vector<1x64xf32>
      %29 = arith.addf %27, %28 : vector<1x64xf32>
      %c0_19 = arith.constant 0 : index
      %c0_20 = arith.constant 0 : index
      %30 = vector.load %arg10[%c0_19, %c0_20] : memref<1x64xf32, #tpu.memory_space<vmem>>, vector<1x64xf32>
      tpu.vector_store %arg10[%c0_19, %c0_20], %29 {strides = array<i32>} : memref<1x64xf32, #tpu.memory_space<vmem>>, vector<1x64xf32>,
    } else {
    }
    %c1_i32 = arith.constant 1 : i32
    %3 = arith.cmpi eq, %arg0, %c1_i32 : i32
    %4 = arith.extui %3 : i1 to i32
    %c0_i32_1 = arith.constant 0 : i32
    %5 = arith.cmpi ne, %4, %c0_i32_1 : i32
    scf.if %5 {
      %c0_i32_2 = arith.constant 0 : i32
      %6 = arith.cmpi eq, %arg1, %c0_i32_2 : i32
      %7 = arith.extui %6 : i1 to i32
      %c0_i32_3 = arith.constant 0 : i32
      %8 = arith.cmpi ne, %7, %c0_i32_3 : i32
      scf.if %8 {
        %c0_16 = arith.constant 0 : index
        %c0_17 = arith.constant 0 : index
        %30 = vector.load %arg11[%c0_16, %c0_17] : memref<1x64xf32, #tpu.memory_space<vmem>>, vector<1x64xf32>
        %c0_18 = arith.constant 0 : index
        %c0_19 = arith.constant 0 : index
        %31 = vector.load %arg9[%c0_18, %c0_19] : memref<1x64xf32, #tpu.memory_space<vmem>>, vector<1x64xf32>
        %c0_20 = arith.constant 0 : index
        %c0_21 = arith.constant 0 : index
        %32 = vector.load %arg10[%c0_20, %c0_21] : memref<1x64xf32, #tpu.memory_space<vmem>>, vector<1x64xf32>
        %cst_22 = arith.constant 5.600000e+01 : f32
        %33 = vector.broadcast %cst_22 : f32 to vector<1x64xf32>
        %34 = arith.mulf %33, %30 : vector<1x64xf32>
        %35 = arith.addf %31, %34 : vector<1x64xf32>
        %cst_23 = arith.constant 5.600000e+01 : f32
        %36 = vector.broadcast %cst_23 : f32 to vector<1x64xf32>
        %37 = arith.mulf %36, %30 : vector<1x64xf32>
        %38 = arith.mulf %37, %30 : vector<1x64xf32>
        %39 = arith.subf %32, %38 : vector<1x64xf32>
        %cst_24 = arith.constant 5.000000e-03 : f32
        %40 = vector.broadcast %cst_24 : f32 to vector<1x64xf32>
        %41 = arith.mulf %35, %40 : vector<1x64xf32>
        %cst_25 = arith.constant 5.000000e-03 : f32
        %42 = vector.broadcast %cst_25 : f32 to vector<1x64xf32>
        %43 = arith.mulf %39, %42 : vector<1x64xf32>
        %44 = arith.mulf %41, %41 : vector<1x64xf32>
        %45 = arith.subf %43, %44 : vector<1x64xf32>
        %c0_26 = arith.constant 0 : index
        %c0_27 = arith.constant 0 : index
        %46 = vector.load %arg4[%c0_26, %c0_27] : memref<1x64xf32, #tpu.memory_space<vmem>>, vector<1x64xf32>
        %cst_28 = arith.constant 9.99999974E-6 : f32
        %47 = vector.broadcast %cst_28 : f32 to vector<1x64xf32>
        %48 = arith.addf %45, %47 : vector<1x64xf32>
        %49 = math.rsqrt %48 : vector<1x64xf32>
        %50 = arith.mulf %46, %49 : vector<1x64xf32>
        %c0_29 = arith.constant 0 : index
        %c0_30 = arith.constant 0 : index
        %51 = vector.load %arg12[%c0_29, %c0_30] : memref<1x64xf32, #tpu.memory_space<vmem>>, vector<1x64xf32>
        tpu.vector_store %arg12[%c0_29, %c0_30], %50 {strides = array<i32>} : memref<1x64xf32, #tpu.memory_space<vmem>>, vector<1x64xf32>,
        %c0_31 = arith.constant 0 : index
        %c0_32 = arith.constant 0 : index
        %52 = vector.load %arg5[%c0_31, %c0_32] : memref<1x64xf32, #tpu.memory_space<vmem>>, vector<1x64xf32>
        %53 = arith.addf %30, %41 : vector<1x64xf32>
        %54 = arith.mulf %53, %50 : vector<1x64xf32>
        %55 = arith.subf %52, %54 : vector<1x64xf32>
        %c0_33 = arith.constant 0 : index
        %c0_34 = arith.constant 0 : index
        %56 = vector.load %arg13[%c0_33, %c0_34] : memref<1x64xf32, #tpu.memory_space<vmem>>, vector<1x64xf32>
        tpu.vector_store %arg13[%c0_33, %c0_34], %55 {strides = array<i32>} : memref<1x64xf32, #tpu.memory_space<vmem>>, vector<1x64xf32>,
      } else {
      }
      %c128_i32 = arith.constant 128 : i32
      %9 = arith.muli %arg1, %c128_i32 : i32
      %10 = tpu.assume_multiple %9, 128 : i32
      %11 = arith.index_cast %10 : i32 to index
      %c0 = arith.constant 0 : index
      %12 = vector.load %arg14[%11, %c0] : memref<256x64xf32, #tpu.memory_space<vmem>>, vector<128x64xf32>
      %c0_4 = arith.constant 0 : index
      %c0_5 = arith.constant 0 : index
      %13 = vector.load %arg12[%c0_4, %c0_5] : memref<1x64xf32, #tpu.memory_space<vmem>>, vector<1x64xf32>
      %14 = vector.broadcast %13 : vector<1x64xf32> to vector<128x64xf32>
      %15 = arith.mulf %12, %14 : vector<128x64xf32>
      %c0_6 = arith.constant 0 : index
      %c0_7 = arith.constant 0 : index
      %16 = vector.load %arg13[%c0_6, %c0_7] : memref<1x64xf32, #tpu.memory_space<vmem>>, vector<1x64xf32>
      %17 = vector.broadcast %16 : vector<1x64xf32> to vector<128x64xf32>
      %18 = arith.addf %15, %17 : vector<128x64xf32>
      %cst = arith.constant 0.000000e+00 : f32
      %19 = vector.broadcast %cst : f32 to vector<128x64xf32>
      %20 = arith.maximumf %18, %19 : vector<128x64xf32>
      %c0_8 = arith.constant 0 : index
      %c0_9 = arith.constant 0 : index
      %21 = vector.load %arg6[%c0_8, %c0_9] : memref<8x64xf32, #tpu.memory_space<vmem>>, vector<8x64xf32>
      %cst_10 = arith.constant dense<0.000000e+00> : vector<8x128xf32>
      %22 = tpu.matmul %21, %20, %cst_10 {dimension_numbers = #tpu.dot_dimension_numbers<[1], [1], [0], [0], [0, 0, 1, 0], [], []>} : vector<8x64xf32>, vector<128x64xf32>, vector<8x128xf32> -> vector<8x128xf32>
      %23 = vector.extract_strided_slice %22 {offsets = [0, 0], sizes = [1, 128], strides = [1, 1]} : vector<8x128xf32> to vector<1x128xf32>
      %c0_11 = arith.constant 0 : index
      %c0_12 = arith.constant 0 : index
      %24 = vector.load %arg7[%c0_11, %c0_12] : memref<1x1xf32, #tpu.memory_space<vmem>>, vector<1x1xf32>
      %25 = vector.broadcast %24 : vector<1x1xf32> to vector<1x128xf32>
      %26 = arith.addf %23, %25 : vector<1x128xf32>
      %cst_13 = arith.constant 0.000000e+00 : f32
      %27 = vector.broadcast %cst_13 : f32 to vector<1x128xf32>
      %28 = arith.maximumf %26, %27 : vector<1x128xf32>
      %c0_14 = arith.constant 0 : index
      %c0_15 = arith.constant 0 : index
      %29 = vector.load %arg8[%c0_14, %c0_15] : memref<1x128xf32, #tpu.memory_space<vmem>>, vector<1x128xf32>
      tpu.vector_store %arg8[%c0_14, %c0_15], %28 {strides = array<i32>} : memref<1x128xf32, #tpu.memory_space<vmem>>, vector<1x128xf32>,
    } else {
    }
    return
  }
  func.func @transform_0(%arg0: i32, %arg1: i32) -> (i32, i32) {
    %c1_i32 = arith.constant 1 : i32
    %0 = arith.subi %c1_i32, %arg0 : i32
    %1 = arith.muli %0, %arg1 : i32
    %c1_i32_0 = arith.constant 1 : i32
    %2 = arith.muli %arg0, %c1_i32_0 : i32
    %3 = arith.addi %1, %2 : i32
    %c0_i32 = arith.constant 0 : i32
    %c0_i32_1 = arith.constant 0 : i32
    return %3, %c0_i32 : i32, i32
  }
  func.func @transform_1(%arg0: i32, %arg1: i32) -> (i32, i32) {
    %c0_i32 = arith.constant 0 : i32
    %c0_i32_0 = arith.constant 0 : i32
    %c0_i32_1 = arith.constant 0 : i32
    return %c0_i32, %c0_i32_0 : i32, i32
  }
  func.func @transform_2(%arg0: i32, %arg1: i32) -> (i32, i32) {
    %c0_i32 = arith.constant 0 : i32
    %c0_i32_0 = arith.constant 0 : i32
    %c0_i32_1 = arith.constant 0 : i32
    return %c0_i32, %c0_i32_0 : i32, i32
  }
  func.func @transform_3(%arg0: i32, %arg1: i32) -> (i32, i32) {
    %c0_i32 = arith.constant 0 : i32
    %c0_i32_0 = arith.constant 0 : i32
    %c0_i32_1 = arith.constant 0 : i32
    return %c0_i32, %c0_i32_0 : i32, i32
  }
  func.func @transform_4(%arg0: i32, %arg1: i32) -> (i32, i32) {
    %c0_i32 = arith.constant 0 : i32
    %c0_i32_0 = arith.constant 0 : i32
    %c0_i32_1 = arith.constant 0 : i32
    return %c0_i32, %c0_i32_0 : i32, i32
  }
  func.func @transform_5(%arg0: i32, %arg1: i32) -> (i32, i32) {
    %c0_i32 = arith.constant 0 : i32
    %c0_i32_0 = arith.constant 0 : i32
    %c0_i32_1 = arith.constant 0 : i32
    return %c0_i32, %c0_i32_0 : i32, i32
  }
  func.func @transform_6(%arg0: i32, %arg1: i32) -> (i32, i32) {
    %0 = arith.muli %arg1, %arg0 : i32
    %c0_i32 = arith.constant 0 : i32
    %c0_i32_0 = arith.constant 0 : i32
    return %c0_i32, %0 : i32, i32
  }
}

</mosaic_0001>

<bundles_post_ra>
// kernel: tpu_custom_call.1
= control target key start
LH: loop header
LB: loop body
LE: loop exit
PB: predicated region body
PF: predicated region fallthrough
CT: control target
= control target key end

     0   :  { %s2443_s0 = inlined_call_operand.hbm [shape: f32[256,128], index: 0, kind: input, shape index: {}]   ;;  %s2444_s1 = inlined_call_operand.vmem [shape: f32[128,64], index: 1, kind: input, shape index: {}]   ;;  %s2445_s2 = inlined_call_operand.vmem [shape: f32[1,64], index: 2, kind: input, shape index: {}]   ;;  %s2446_s3 = inlined_call_operand.vmem [shape: f32[1,64], index: 3, kind: input, shape index: {}]   ;;  %s2447_s4 = inlined_call_operand.vmem [shape: f32[8,64], index: 4, kind: input, shape index: {}]   ;;  %s2448_s5 = inlined_call_operand.<no memory space> [shape: f32[1,1], index: 5, kind: input, shape index: {}]   ;;  %s2449_s6 = inlined_call_operand.hbm [shape: f32[1,256], index: 6, kind: output, shape index: {}]  }
   0x1   :  { %2455 = sst [smem:[#allocation18_spill]] %s2449_s6  ;;  %v11_v0 = vstv %s2448_s5 }
   0x2   :  { %12 = vst [vmem:[#allocation8] sm:$0x1] %v11_v0 }
   0x3   :  { %13 = vsyncpa [#allocation10], 0 }
   0x4   :  { %15 = vsyncpa [#allocation10 + $0x1], 0 }
   0x5   :  { %16 = vsyncpa [#allocation11], 0 }
   0x6   :  { %18 = vsyncpa [#allocation11 + $0x1], 0  ;;  %s1920_s23 = smov 0   ;;  %s1922_s24 = smov 0  }
   0x7   :  { %s1924_s25 = smov 0   ;;  %s1926_s26 = smov 0  }
   0x8   :  { %s1928_s27 = smov 0   ;;  %s1930_s28 = smov 0  }
   0x9   :  { %s1932_s29 = smov 0   ;;  %s1934_s5 = smov 0  }
   0xa   :  { %s1936_s30 = smov 0   ;;  %s1938_s7 = smov 0  }
   0xb   :  { %s1940_s8 = smov 0  }
   0xc LB: > { %2456 = sst [smem:[#allocation15_spill]] %s1856_s30  ;;  %s1106_s9 = sadd.s32 4294967295, %s1864_s8   ;;  %s1864_s8 = sphi %s1940_s8, %s24_s8   ;;  %s1860_s7 = sphi %s1938_s7, %s2479_s7   ;;  %s1856_s30 = sphi %s1936_s30, %s2472_s30   ;;  %s1852_s5 = sphi %s1934_s5, %s2471_s5   ;;  %s1848_s29 = sphi %s1932_s29, %s2470_s29   ;;  %s1844_s28 = sphi %s1930_s28, %s2478_s28   ;;  %s1840_s27 = sphi %s1928_s27, %s2477_s27   ;;  %s1836_s26 = sphi %s1926_s26, %s2476_s26   ;;  %s1832_s25 = sphi %s1924_s25, %s2475_s25   ;;  %s1828_s24 = sphi %s1922_s24, %s2474_s24   ;;  %s1824_s23 = sphi %s1920_s23, %s2473_s23  }
   0xd   : > { %2457 = sst [smem:[#allocation16_spill]] %s1860_s7  ;;  %s33_s11 = sadd.s32 1, %s1856_s30 }
   0xe   : > { %s36_s12 = sadd.s32 1, %s1860_s7  ;;  %p34_p0 = scmp.ge.s32.totalorder %s33_s11, 2 }
   0xf   : > { %s40_s13 = ssub.s32 1, %s1860_s7  ;;  %s49_s15 = sadd.s32 1, %s1844_s28 }
  0x10   : > { %s41_s14 = smul.u32 %s1856_s30, %s40_s13  ;;  %s2481_s11 = smov (%p34_p0, %s33_s11), 0 }
  0x11   : > { %2458 = sst [smem:[#allocation17_spill]] %s2481_s11  ;;  %s2483_s12 = smov (!%p34_p0, %s36_s12), %s1860_s7 }
  0x12   : > { %s1984_s16 = sadd.s32 %s1860_s7, %s41_s14  ;;  %p56_p1 = scmp.ne.s32.totalorder %s1844_s28, %s1840_s27 }
  0x13   : > { %p38_p2 = scmp.ge.s32.totalorder %s2483_s12, 2  ;;  %p57_p3 = scmp.eq.s32.totalorder %s1864_s8, 0 }
  0x14   : > { %p62_p4 = scmp.ne.s32.totalorder %s1840_s27, %s1836_s26  ;;  %p63_p5 = scmp.eq.s32.totalorder %s1106_s9, 0 }
  0x15   : > { %s2485_s12 = smov (%p38_p2, %s2483_s12), 0  ;;  %p1992_p6 = por %p57_p3, %p56_p1 }
  0x16   : > { %p1996_p7 = por %p63_p5, %p62_p4  ;;  %s43_s19 = ssub.s32 1, %s2485_s12 }
  0x17   : > { %s177_s20 = smul.u32 %s1856_s30, %s1860_s7  ;;  %s182_s22 = sadd.s32 1, %s1832_s25 }
  0x18   : > { %s44_s21 = smul.u32 %s43_s19, %s2481_s11  ;;  %p192_p8 = scmp.ne.s32.totalorder %s1832_s25, %s1828_s24 }
  0x19   : > { %s178_s26 = smul.u32 %s2485_s12, %s2481_s11  ;;  %p193_p9 = scmp.eq.s32.totalorder %s1106_s9, 3 }
  0x1a   : > { %s45_s13 = sadd.s32 %s44_s21, %s2485_s12  ;;  %p198_p13 = scmp.ne.s32.totalorder %s1828_s24, %s1824_s23 }
  0x1b   : > { %s46_s14 = ssub.s32 %s1984_s16, %s45_s13  ;;  %s179_s10 = ssub.s32 %s177_s20, %s178_s26 }
  0x1c   : > { %p47_p10 = scmp.eq.s32.totalorder %s46_s14, 0  ;;  %p180_p11 = scmp.eq.s32.totalorder %s179_s10, 0 }
  0x1d   : > { %p2011_p12 = por %p193_p9, %p192_p8  ;;  %s2462_s30 = sadd.s32 4294967294, %s1864_s8  }
  0x1e   : > { %s2018_s7 = scalar_select %p47_p10, %s1844_s28, %s49_s15  }
  0x1f   : > { %s2461_s6 = scalar_select %p2011_p12, 1, 0 }
  0x20   : > { %s2021_s19 = scalar_select %p180_p11, %s1832_s25, %s182_s22  }
  0x21   : > { %p199_p0 = scmp.eq.s32.totalorder %s2462_s30, 3  ;;  %p1605_p1 = scmp.lt.s32.totalorder %s1864_s8, 4 }
  0x22   : > { %s234_s11 = sand.u32 1, %s1844_s28   ;;  %s1144_s21 = sshll.u32 %s1984_s16, 11 }
  0x23   : > { %p2027_p2 = por %p199_p0, %p198_p13  ;;  %s1110_s20 = sshll.u32 %s234_s11, 7 }
  0x24   : > { %s2035_s13 = scalar_lea.hbm %s2443_s0, %s1144_s21  ;;  %s238_s15 = scalar_lea.vmem [#allocation9], %s1110_s20 }
  0x25   : > { %s2463_s9 = scalar_select %p2027_p2, 1, 0 }
  0x26   : > { %s248_s22 = sshll.u32 %s238_s15, 4  ;;  %p2039_p3 = pnand %p1605_p1, %p1992_p6  ;;  %s2043_s22 = int_to_ptr.vmem [resolvable:$true] %s248_s22 }
  0x27   : > { %s2045_s16 = scalar_lea.sflag [#allocation10], %s234_s11  ;;  %s1712_s14 = scalar_lea.hbm %s2035_s13, 2048 }
  0x28   : > { %p1713_p4 = scmp.ne.s32.totalorder %s2035_s13, %s1712_s14  ;;  %p1714_p5 = pneg %p2039_p3 }
  0x29   : > { %s1717_s21 = scalar_lea.hbm %s2443_s0, 4096  ;;  %p1718_p6 = scmp.lt.u32.totalorder %s2035_s13, %s2443_s0 }
  0x2a   : > { %p1715_p8 = pnand %p1714_p5, %p1713_p4  ;;  %p1719_p10 = scmp.lt.u32.totalorder %s1717_s21, %s1712_s14 }
  0x2b   : > { %p1721_p13 = scmp.lt.u32.totalorder %s1712_s14, %s2035_s13 }
  0x2c   : > { %p1716_p9 = pneg %p1715_p8  ;;  %p1720_p11 = por %p1719_p10, %p1718_p6 }
  0x2e   : > { %p1722_p0 = por %p1721_p13, %p1720_p11 }
  0x30   : > { %p1723_p1 = pnand %p1722_p0, %p1716_p9 }
  0x32   : > { %1726 = shalt.err (!%p1723_p1)
}
  0x33   : > { %s1727_s11 = scalar_lea.vmem %s2043_s22, 2048  ;;  %s1866_s15 = smov [#allocation9]  }
  0x34   : > { %p1728_p4 = scmp.ne.s32.totalorder %s2043_s22, %s1727_s11  ;;  %s1732_s20 = sshll.u32 %s1866_s15, 4  ;;  %s1733_s20 = int_to_ptr.vmem [resolvable:$false] %s1732_s20 }
  0x35   : > { %s1734_s17 = scalar_lea.vmem %s1733_s20, 4096  ;;  %p1735_p12 = scmp.lt.s32.totalorder %s2043_s22, %s1733_s20 }
  0x36   : > { %p1730_p8 = pnand %p1728_p4, %p1714_p5  ;;  %p1736_p6 = scmp.lt.s32.totalorder %s1734_s17, %s1727_s11 }
  0x38   : > { %p1731_p2 = pneg %p1730_p8  ;;  %p1737_p10 = por %p1736_p6, %p1735_p12 }
  0x3a   : > { %p1738_p11 = pnand %p1737_p10, %p1731_p2 }
  0x3c   : > { %1741 = shalt.err (!%p1738_p11)
}
  0x3d   : > { %s1867_s14 = smov 128   ;;  %s1868_s21 = smov 8  }
  0x3e   : > { %1600 = dma.hbm_to_vmem [thread:$0]  (!%p2039_p3), %s2035_s13, 2048, %s2043_s22, %s2045_s16, %s1867_s14, %s1867_s14, %s1868_s21  }
  0x3f   : > { %p1113_p5 = scmp.ge.s32.totalorder %s1864_s8, 1  ;;  %p256_p9 = scmp.lt.s32.totalorder %s1864_s8, 5 }
  0x41   : > { %p257_p13 = pnand %p1113_p5, %p256_p9 }
  0x42   : > { %s262_s10 = sand.u32 (!%p257_p13), 1, %s1840_s27  }
  0x43   : > { %260 = sbr.rel (%p257_p13) target bundleno = 1191 (0x4a7), region = 44  ;;  %s1114_s26 = sshll.u32 (!%p257_p13), %s262_s10, 7 }
  0x44   : > { %s263_s11 = scalar_lea.sflag (!%p257_p13), [#allocation10], %s262_s10  ;;  %s2076_s15 = scalar_lea.vmem (!%p257_p13), [#allocation9], %s1114_s26 }
  0x4a   : > { %1815 = dma.done.wait (%p1996_p7), %s263_s11, 2048  }
  0x4b   : > { %1817 = vsyncadd (%p1996_p7), %s263_s11, 4294965248  ;;  %s292_s30 = sand.u32 1, %s1828_s24   ;;  %p1115_p12 = scmp.ne.s32.totalorder %s1852_s5, 0 }
  0x4c   : > { %s2085_s13 = scalar_lea.vmem [#allocation12], %s292_s30  ;;  %v319_v1 = vld [vmem:[%s2444_s1] sm:$0xff] (!%p1115_p12)  ;;  %v320_v2 = vld [vmem:[%s2444_s1 + $0x8] sm:$0xff] (!%p1115_p12)  ;;  %v321_v3 = vld [vmem:[%s2444_s1 + $0x10] sm:$0xff] (!%p1115_p12)  ;;  %s1116_s20 = sshll.u32 (!%p1115_p12), %s1848_s29, 7  ;;  %vm482_vm0 = vcmask (!%p1115_p12), 523264  }
  0x4d   : > { %302 = sbr.rel (%p1115_p12) target bundleno = 831 (0x33f), region = 52  ;;  %v1441_v4 = vpack.c.bf16 (!%p1115_p12), %v320_v2, %v319_v1  ;;  %v322_v5 = vld [vmem:[%s2444_s1 + $0x18] sm:$0xff] (!%p1115_p12)  ;;  %v323_v7 = vld [vmem:[%s2444_s1 + $0x20] sm:$0xff] (!%p1115_p12)  ;;  %v324_v8 = vld [vmem:[%s2444_s1 + $0x28] sm:$0xff] (!%p1115_p12)  ;;  %s481_s17 = scalar_lea.vmem (!%p1115_p12), [#allocation7], %s1116_s20 }
  0x4e   : > { %v1445_v6 = vpack.c.bf16 (!%p1115_p12), %v322_v5, %v321_v3  ;;  %v1449_v9 = vpack.c.bf16 (!%p1115_p12), %v324_v8, %v323_v7  ;;  %v303_v10 = vld [vmem:[%s2076_s15] sm:$0xff] (!%p1115_p12)  ;;  %v325_v12 = vld [vmem:[%s2444_s1 + $0x30] sm:$0xff] (!%p1115_p12)  ;;  %v326_v13 = vld [vmem:[%s2444_s1 + $0x38] sm:$0xff] (!%p1115_p12)  ;;  %p1117_p7 = scmp.ne.s32.totalorder (!%p1115_p12), %s1848_s29, 0 }
  0x4f   : > { %1442 = vmatprep.subr.bf16.mxu0 (!%p1115_p12), %v1441_v4  ;;  %1577 = vmatprep.subr.bf16.mxu1 (!%p1115_p12), %v1441_v4  ;;  %v311_v11 = vld [vmem:[%s2076_s15 + $0x40] sm:$0xff] (!%p1115_p12)  ;;  %v1453_v14 = vpack.c.bf16 (!%p1115_p12), %v326_v13, %v325_v12  ;;  %v329_v18 = vld [vmem:[%s2444_s1 + $0x50] sm:$0xff] (!%p1115_p12)  ;;  %v330_v19 = vld [vmem:[%s2444_s1 + $0x58] sm:$0xff] (!%p1115_p12) }
  0x50   : > { %1444 = vmatpush3.bf16.msra.mxu0 (!%p1115_p12), %v1441_v4  ;;  %1585 = vmatpush3.bf16.msra.mxu1 (!%p1115_p12), %v1441_v4  ;;  %v327_v15 = vld [vmem:[%s2444_s1 + $0x40] sm:$0xff] (!%p1115_p12)  ;;  %v328_v16 = vld [vmem:[%s2444_s1 + $0x48] sm:$0xff] (!%p1115_p12)  ;;  %v1461_v20 = vpack.c.bf16 (!%p1115_p12), %v330_v19, %v329_v18  ;;  %v333_v24 = vld [vmem:[%s2444_s1 + $0x70] sm:$0xff] (!%p1115_p12) }
  0x51   : > { %1446 = vmatprep.subr.bf16.mxu0 (!%p1115_p12), %v1445_v6  ;;  %1578 = vmatprep.subr.bf16.mxu1 (!%p1115_p12), %v1445_v6  ;;  %v1457_v17 = vpack.c.bf16 (!%p1115_p12), %v328_v16, %v327_v15  ;;  %v331_v21 = vld [vmem:[%s2444_s1 + $0x60] sm:$0xff] (!%p1115_p12)  ;;  %v332_v22 = vld [vmem:[%s2444_s1 + $0x68] sm:$0xff] (!%p1115_p12)  ;;  %v334_v25 = vld [vmem:[%s2444_s1 + $0x78] sm:$0xff] (!%p1115_p12) }
  0x52   : > { %1277 = vmatprep.mubr.f32.mxu0 (!%p1115_p12), %v303_v10  ;;  %1289 = vmatprep.mubr.f32.mxu1 (!%p1115_p12), %v311_v11  ;;  %v1465_v23 = vpack.c.bf16 (!%p1115_p12), %v332_v22, %v331_v21  ;;  %v1469_v26 = vpack.c.bf16 (!%p1115_p12), %v334_v25, %v333_v24  ;;  %v304_v27 = vld [vmem:[%s2076_s15 + $0x8] sm:$0xff] (!%p1115_p12)  ;;  %v305_v29 = vld [vmem:[%s2076_s15 + $0x10] sm:$0xff] (!%p1115_p12)  ;;  %v306_v31 = vld [vmem:[%s2076_s15 + $0x18] sm:$0xff] (!%p1115_p12) }
  0x53   : > { %v312_v28 = vld [vmem:[%s2076_s15 + $0x48] sm:$0xff] (!%p1115_p12)  ;;  %v313_v30 = vld [vmem:[%s2076_s15 + $0x50] sm:$0xff] (!%p1115_p12)  ;;  %v314_v32 = vld [vmem:[%s2076_s15 + $0x58] sm:$0xff] (!%p1115_p12) }
  0x54   : > { %1448 = vmatpush3.bf16.msra.mxu0 %v1445_v6  ;;  %1586 = vmatpush3.bf16.msra.mxu1 %v1445_v6  ;;  %v307_v33 = vld [vmem:[%s2076_s15 + $0x20] sm:$0xff]  ;;  %v308_v35 = vld [vmem:[%s2076_s15 + $0x28] sm:$0xff]  ;;  %v309_v37 = vld [vmem:[%s2076_s15 + $0x30] sm:$0xff]  ;;  %v1869_v58 = vmov (!%p1117_p7), 0.0|0.0   ;;  %vm503_vm1 = vcmask (!%p1117_p7), 516096   ;;  %v1870_v60 = vmov (!%p1117_p7), 0.0  }
  0x55   : > { %1450 = vmatprep.subr.bf16.mxu0 %v1449_v9  ;;  %1579 = vmatprep.subr.bf16.mxu1 %v1449_v9  ;;  %v315_v34 = vld [vmem:[%s2076_s15 + $0x60] sm:$0xff]  ;;  %v316_v36 = vld [vmem:[%s2076_s15 + $0x68] sm:$0xff]  ;;  %v317_v38 = vld [vmem:[%s2076_s15 + $0x70] sm:$0xff]  ;;  %504 = vst.msk [vmem:[#allocation2] sm:$0x1] (!%p1117_p7), %vm503_vm1, %v1870_v60  ;;  %vm1871_vm2 = vmmov (!%p1117_p7), 0  }
  0x56   : > { %v310_v39 = vld [vmem:[%s2076_s15 + $0x38] sm:$0xff]  ;;  %505 = vst.msk [vmem:[#allocation3] sm:$0x1] (!%p1117_p7), %vm503_vm1, %v1870_v60  ;;  %v1872_v3 = vmov (!%p1117_p7), 1.0  }
  0x57   : > { %v318_v40 = vld [vmem:[%s2076_s15 + $0x78] sm:$0xff] }
  0x58   : > { %1452 = vmatpush3.bf16.msra.mxu0 %v1449_v9  ;;  %1587 = vmatpush3.bf16.msra.mxu1 %v1449_v9 }
  0x59   : > { %1454 = vmatprep.subr.bf16.mxu0 %v1453_v14  ;;  %1580 = vmatprep.subr.bf16.mxu1 %v1453_v14 }
  0x5c   : > { %1456 = vmatpush3.bf16.msra.mxu0 %v1453_v14  ;;  %1588 = vmatpush3.bf16.msra.mxu1 %v1453_v14 }
  0x5d   : > { %1458 = vmatprep.subr.bf16.mxu0 %v1457_v17  ;;  %1581 = vmatprep.subr.bf16.mxu1 %v1457_v17 }
  0x60   : > { %1460 = vmatpush3.bf16.msra.mxu0 %v1457_v17  ;;  %1589 = vmatpush3.bf16.msra.mxu1 %v1457_v17 }
  0x61   : > { %1462 = vmatprep.subr.bf16.mxu0 %v1461_v20  ;;  %1582 = vmatprep.subr.bf16.mxu1 %v1461_v20 }
  0x64   : > { %1464 = vmatpush3.bf16.msra.mxu0 %v1461_v20  ;;  %1590 = vmatpush3.bf16.msra.mxu1 %v1461_v20 }
  0x65   : > { %1466 = vmatprep.subr.bf16.mxu0 %v1465_v23  ;;  %1583 = vmatprep.subr.bf16.mxu1 %v1465_v23 }
  0x68   : > { %1468 = vmatpush3.bf16.msra.mxu0 %v1465_v23  ;;  %1591 = vmatpush3.bf16.msra.mxu1 %v1465_v23 }
  0x69   : > { %1470 = vmatprep.subr.bf16.mxu0 %v1469_v26  ;;  %1584 = vmatprep.subr.bf16.mxu1 %v1469_v26 }
  0x6c   : > { %1472 = vmatpush3.bf16.msra.mxu0 %v1469_v26  ;;  %1592 = vmatpush3.bf16.msra.mxu1 %v1469_v26 }
  0x6d   : > { %1473 = vmatprep.subr.bf16.mxu0 (!%p1117_p7), %v1869_v58 }
  0x6f   : > { %1278 = vmatmul.mubr.f32.vlgmr.msra.gmra.mrb[0].mxu0 %v304_v27  ;;  %1290 = vmatmul.mubr.f32.vlgmr.msra.gmra.mrb[0].mxu1 %v312_v28 }
  0x70   : > { %1280 = vmatprep.mubr.f32.mxu0 %v305_v29  ;;  %1292 = vmatprep.mubr.f32.mxu1 %v313_v30 }
  0x73   : > { %1281 = vmatmul.mubr.f32.gmra.mrb[2].mxu0 %v306_v31  ;;  %1293 = vmatmul.mubr.f32.gmra.mrb[2].mxu1 %v314_v32 }
  0x74   : > { %1283 = vmatprep.mubr.f32.mxu0 %v307_v33  ;;  %1295 = vmatprep.mubr.f32.mxu1 %v315_v34 }
  0x77   : > { %1284 = vmatmul.mubr.f32.gmra.mrb[4].mxu0 %v308_v35  ;;  %1296 = vmatmul.mubr.f32.gmra.mrb[4].mxu1 %v316_v36 }
  0x78   : > { %1286 = vmatprep.mubr.f32.mxu0 %v309_v37  ;;  %1298 = vmatprep.mubr.f32.mxu1 %v317_v38 }
  0x7b   : > { %1287 = vmatmul.mubr.f32.gmra.mrb[6].mxu0 %v310_v39  ;;  %1299 = vmatmul.mubr.f32.gmra.mrb[6].mxu1 %v318_v40 }
  0x7c   : > { %1333 = vmatprep.mubr.msk.f32.mxu0 (!%p1117_p7), %vm1871_vm2, %v1870_v60 }
 0x142   : > { %v2153_v41 = vpop.f32.mrb[0].mxu0  ;;  %v2155_v42 = vpop.f32.mrb[0].mxu1 }
 0x143   : > { %484 = vst.msk [vmem:[%s481_s17 + $0x8] sm:$0xff] %vm482_vm0, %v2153_v41  ;;  %492 = vst.msk [vmem:[%s481_s17 + $0x48] sm:$0xff] %vm482_vm0, %v2155_v42  ;;  %v2161_v43 = vpop.f32.mrb[1].mxu0  ;;  %v2163_v44 = vpop.f32.mrb[1].mxu1 }
 0x144   : > { %483 = vst.msk [vmem:[%s481_s17] sm:$0xff] %vm482_vm0, %v2161_v43  ;;  %491 = vst.msk [vmem:[%s481_s17 + $0x40] sm:$0xff] %vm482_vm0, %v2163_v44  ;;  %v1474_v57 = vpack.c.bf16 (!%p1117_p7), %v2153_v41, %v2161_v43  ;;  %v1486_v63 = vpack.c.bf16 (!%p1117_p7), %v2155_v42, %v2163_v44 }
 0x146   : > { %v2169_v45 = vpop.f32.mrb[2].mxu0  ;;  %v2171_v46 = vpop.f32.mrb[2].mxu1  ;;  %1475 = vmatpush3.bf16.msra.mxu0 (!%p1117_p7), %v1474_v57 }
 0x147   : > { %486 = vst.msk [vmem:[%s481_s17 + $0x18] sm:$0xff] %vm482_vm0, %v2169_v45  ;;  %494 = vst.msk [vmem:[%s481_s17 + $0x58] sm:$0xff] %vm482_vm0, %v2171_v46  ;;  %v2177_v47 = vpop.f32.mrb[3].mxu0  ;;  %v2179_v48 = vpop.f32.mrb[3].mxu1  ;;  %1476 = vmatprep.subr.bf16.mxu0 (!%p1117_p7), %v1869_v58 }
 0x148   : > { %485 = vst.msk [vmem:[%s481_s17 + $0x10] sm:$0xff] %vm482_vm0, %v2177_v47  ;;  %493 = vst.msk [vmem:[%s481_s17 + $0x50] sm:$0xff] %vm482_vm0, %v2179_v48  ;;  %v1477_v59 = vpack.c.bf16 (!%p1117_p7), %v2169_v45, %v2177_v47  ;;  %v1489_v0 = vpack.c.bf16 (!%p1117_p7), %v2171_v46, %v2179_v48 }
 0x14a   : > { %v2185_v49 = vpop.f32.mrb[4].mxu0  ;;  %v2187_v50 = vpop.f32.mrb[4].mxu1  ;;  %502 = sbr.rel (%p1117_p7) target bundleno = 572 (0x23c), region = 56  ;;  %1478 = vmatpush3.bf16.msra.mxu0 (!%p1117_p7), %v1477_v59 }
 0x14b   : > { %488 = vst.msk [vmem:[%s481_s17 + $0x28] sm:$0xff] %vm482_vm0, %v2185_v49  ;;  %496 = vst.msk [vmem:[%s481_s17 + $0x68] sm:$0xff] %vm482_vm0, %v2187_v50  ;;  %v421_v51 = vpop.f32.mrb[5].mxu0  ;;  %v2193_v52 = vpop.f32.mrb[5].mxu1  ;;  %1479 = vmatprep.subr.bf16.mxu0 (!%p1117_p7), %v1869_v58 }
 0x14c   : > { %487 = vst.msk [vmem:[%s481_s17 + $0x20] sm:$0xff] %vm482_vm0, %v421_v51  ;;  %495 = vst.msk [vmem:[%s481_s17 + $0x60] sm:$0xff] %vm482_vm0, %v2193_v52  ;;  %v1480_v61 = vpack.c.bf16 (!%p1117_p7), %v2185_v49, %v421_v51  ;;  %v1492_v1 = vpack.c.bf16 (!%p1117_p7), %v2187_v50, %v2193_v52 }
 0x14e   : > { %v2198_v53 = vpop.f32.mrb[6].mxu0  ;;  %v2200_v54 = vpop.f32.mrb[6].mxu1  ;;  %1481 = vmatpush3.bf16.msra.mxu0 (!%p1117_p7), %v1480_v61 }
 0x14f   : > { %490 = vst.msk [vmem:[%s481_s17 + $0x38] sm:$0xff] %vm482_vm0, %v2198_v53  ;;  %498 = vst.msk [vmem:[%s481_s17 + $0x78] sm:$0xff] %vm482_vm0, %v2200_v54  ;;  %v2206_v55 = vpop.f32.mrb[7].mxu0  ;;  %v2208_v56 = vpop.f32.mrb[7].mxu1  ;;  %1482 = vmatprep.subr.bf16.mxu0 (!%p1117_p7), %v1869_v58 }
 0x150   : > { %489 = vst.msk [vmem:[%s481_s17 + $0x30] sm:$0xff] %vm482_vm0, %v2206_v55  ;;  %497 = vst.msk [vmem:[%s481_s17 + $0x70] sm:$0xff] %vm482_vm0, %v2208_v56  ;;  %v1483_v62 = vpack.c.bf16 (!%p1117_p7), %v2198_v53, %v2206_v55  ;;  %v1495_v2 = vpack.c.bf16 (!%p1117_p7), %v2200_v54, %v2208_v56 }
 0x152   : > { %1484 = vmatpush3.bf16.msra.mxu0 %v1483_v62 }
 0x153   : > { %1485 = vmatprep.subr.bf16.mxu0 %v1869_v58 }
 0x156   : > { %1487 = vmatpush3.bf16.msra.mxu0 %v1486_v63 }
 0x157   : > { %1488 = vmatprep.subr.bf16.mxu0 %v1869_v58 }
 0x15a   : > { %1490 = vmatpush3.bf16.msra.mxu0 %v1489_v0 }
 0x15b   : > { %1491 = vmatprep.subr.bf16.mxu0 %v1869_v58 }
 0x15e   : > { %1493 = vmatpush3.bf16.msra.mxu0 %v1492_v1 }
 0x15f   : > { %1494 = vmatprep.subr.bf16.mxu0 %v1869_v58 }
 0x162   : > { %1496 = vmatpush3.bf16.msra.mxu0 %v1495_v2 }
 0x165   : > { %1334 = vmatmul.mubr.f32.vlgmr.msra.gmra.mrb[0].mxu0 %v1872_v3 }
 0x238   : > { %v572_v4 = vpop.f32.mrb[0].mxu0 }
 0x239   : > { %v576_v5 = vmul.f32 0.0078125, %v572_v4  ;;  %v1335_v6 = vpop.f32.mrb[1].mxu0 }
 0x23b   : > { %577 = vst.msk [vmem:[#allocation4] sm:$0x1] %vm503_vm1, %v576_v5 }
 0x23c PF: > { %v1873_v8 = vmov 0.0|0.0   ;;  %vm1874_vm3 = vmmov 0   ;;  %v1875_v15 = vmov 0.0   ;;  %v757_v59 = vld [vmem:[#allocation2] sm:$0x1]  ;;  %vm759_vm4 = vcmask 516096  }
 0x23d   : > { %1497 = vmatprep.subr.bf16.mxu0 %v1873_v8  ;;  %1521 = vmatprep.subr.bf16.mxu1 %v1873_v8  ;;  %v761_v61 = vld [vmem:[#allocation3] sm:$0x1] }
 0x23e   : > { %1368 = vmatprep.mubr.msk.f32.mxu0 %vm1874_vm3, %v1875_v15  ;;  %1403 = vmatprep.mubr.msk.f32.mxu1 %vm1874_vm3, %v1875_v15 }
 0x242   : > { %v2233_v7 = vld [vmem:[#allocation4] ss:$0 sm:$0xff] }
 0x243   : > { %v585_v9 = vsub.f32 %v2161_v43, %v2233_v7  ;;  %v586_v10 = vsub.f32 %v2153_v41, %v2233_v7  ;;  %v587_v11 = vsub.f32 %v2177_v47, %v2233_v7  ;;  %v588_v12 = vsub.f32 %v2169_v45, %v2233_v7 }
 0x244   : > { %v589_v13 = vsub.f32 %v421_v51, %v2233_v7  ;;  %v590_v14 = vsub.f32 %v2185_v49, %v2233_v7  ;;  %v591_v23 = vsub.f32 %v2206_v55, %v2233_v7  ;;  %v592_v27 = vsub.f32 %v2198_v53, %v2233_v7 }
 0x245   : > { %v1498_v16 = vpack.c.bf16 %v586_v10, %v585_v9  ;;  %v671_v17 = vmul.f32 %v585_v9, %v585_v9  ;;  %v672_v18 = vmul.f32 %v586_v10, %v586_v10  ;;  %v673_v19 = vmul.f32 %v587_v11, %v587_v11 }
 0x246   : > { %v674_v20 = vmul.f32 %v588_v12, %v588_v12  ;;  %v1501_v22 = vpack.c.bf16 %v588_v12, %v587_v11  ;;  %v675_v25 = vmul.f32 %v589_v13, %v589_v13  ;;  %v676_v26 = vmul.f32 %v590_v14, %v590_v14 }
 0x247   : > { %1499 = vmatpush3.bf16.msra.mxu0 %v1498_v16  ;;  %v1522_v21 = vpack.c.bf16 %v672_v18, %v671_v17  ;;  %v1504_v28 = vpack.c.bf16 %v590_v14, %v589_v13  ;;  %v677_v29 = vmul.f32 %v591_v23, %v591_v23  ;;  %v678_v31 = vmul.f32 %v592_v27, %v592_v27 }
 0x248   : > { %1500 = vmatprep.subr.bf16.mxu0 %v1873_v8  ;;  %v1525_v24 = vpack.c.bf16 %v674_v20, %v673_v19  ;;  %v1528_v30 = vpack.c.bf16 %v676_v26, %v675_v25  ;;  %v593_v32 = vsub.f32 %v2163_v44, %v2233_v7  ;;  %v594_v33 = vsub.f32 %v2155_v42, %v2233_v7 }
 0x249   : > { %1523 = vmatpush3.bf16.msra.mxu1 %v1522_v21  ;;  %v1507_v34 = vpack.c.bf16 %v592_v27, %v591_v23  ;;  %v595_v35 = vsub.f32 %v2179_v48, %v2233_v7  ;;  %v1531_v36 = vpack.c.bf16 %v678_v31, %v677_v29  ;;  %v596_v39 = vsub.f32 %v2171_v46, %v2233_v7 }
 0x24a   : > { %1524 = vmatprep.subr.bf16.mxu1 %v1873_v8  ;;  %v679_v37 = vmul.f32 %v593_v32, %v593_v32  ;;  %v680_v38 = vmul.f32 %v594_v33, %v594_v33  ;;  %v1510_v40 = vpack.c.bf16 %v594_v33, %v593_v32  ;;  %v597_v44 = vsub.f32 %v2193_v52, %v2233_v7 }
 0x24b   : > { %1502 = vmatpush3.bf16.msra.mxu0 %v1501_v22  ;;  %v681_v41 = vmul.f32 %v595_v35, %v595_v35  ;;  %v682_v43 = vmul.f32 %v596_v39, %v596_v39  ;;  %v598_v45 = vsub.f32 %v2187_v50, %v2233_v7  ;;  %v1513_v46 = vpack.c.bf16 %v596_v39, %v595_v35 }
 0x24c   : > { %1503 = vmatprep.subr.bf16.mxu0 %v1873_v8  ;;  %v1534_v42 = vpack.c.bf16 %v680_v38, %v679_v37  ;;  %v599_v47 = vsub.f32 %v2208_v56, %v2233_v7  ;;  %v683_v49 = vmul.f32 %v597_v44, %v597_v44  ;;  %v600_v53 = vsub.f32 %v2200_v54, %v2233_v7 }
 0x24d   : > { %1526 = vmatpush3.bf16.msra.mxu1 %v1525_v24  ;;  %v1537_v48 = vpack.c.bf16 %v682_v43, %v681_v41  ;;  %v684_v51 = vmul.f32 %v598_v45, %v598_v45  ;;  %v1516_v50 = vpack.c.bf16 %v598_v45, %v597_v44  ;;  %v1876_v54 = vmov 1.0  }
 0x24e   : > { %1527 = vmatprep.subr.bf16.mxu1 %v1873_v8  ;;  %v685_v55 = vmul.f32 %v599_v47, %v599_v47  ;;  %v686_v57 = vmul.f32 %v600_v53, %v600_v53  ;;  %v1519_v56 = vpack.c.bf16 %v600_v53, %v599_v47 }
 0x24f   : > { %1505 = vmatpush3.bf16.msra.mxu0 %v1504_v28  ;;  %v1540_v52 = vpack.c.bf16 %v684_v51, %v683_v49 }
 0x250   : > { %1506 = vmatprep.subr.bf16.mxu0 %v1873_v8  ;;  %v1543_v58 = vpack.c.bf16 %v686_v57, %v685_v55 }
 0x251   : > { %1529 = vmatpush3.bf16.msra.mxu1 %v1528_v30 }
 0x252   : > { %1530 = vmatprep.subr.bf16.mxu1 %v1873_v8 }
 0x253   : > { %1508 = vmatpush3.bf16.msra.mxu0 %v1507_v34 }
 0x254   : > { %1509 = vmatprep.subr.bf16.mxu0 %v1873_v8 }
 0x255   : > { %1532 = vmatpush3.bf16.msra.mxu1 %v1531_v36 }
 0x256   : > { %1533 = vmatprep.subr.bf16.mxu1 %v1873_v8 }
 0x257   : > { %1511 = vmatpush3.bf16.msra.mxu0 %v1510_v40 }
 0x258   : > { %1512 = vmatprep.subr.bf16.mxu0 %v1873_v8 }
 0x259   : > { %1535 = vmatpush3.bf16.msra.mxu1 %v1534_v42 }
 0x25a   : > { %1536 = vmatprep.subr.bf16.mxu1 %v1873_v8 }
 0x25b   : > { %1514 = vmatpush3.bf16.msra.mxu0 %v1513_v46 }
 0x25c   : > { %1515 = vmatprep.subr.bf16.mxu0 %v1873_v8 }
 0x25d   : > { %1538 = vmatpush3.bf16.msra.mxu1 %v1537_v48 }
 0x25e   : > { %1539 = vmatprep.subr.bf16.mxu1 %v1873_v8 }
 0x25f   : > { %1517 = vmatpush3.bf16.msra.mxu0 %v1516_v50 }
 0x260   : > { %1518 = vmatprep.subr.bf16.mxu0 %v1873_v8 }
 0x261   : > { %1541 = vmatpush3.bf16.msra.mxu1 %v1540_v52 }
 0x262   : > { %1542 = vmatprep.subr.bf16.mxu1 %v1873_v8 }
 0x263   : > { %1520 = vmatpush3.bf16.msra.mxu0 %v1519_v56 }
 0x265   : > { %1544 = vmatpush3.bf16.msra.mxu1 %v1543_v58 }
 0x266   : > { %1369 = vmatmul.mubr.f32.vlgmr.msra.gmra.mrb[0].mxu0 %v1876_v54 }
 0x268   : > { %1404 = vmatmul.mubr.f32.vlgmr.msra.gmra.mrb[0].mxu1 %v1876_v54 }
 0x339   : > { %v667_v60 = vpop.f32.mrb[0].mxu0 }
 0x33a   : > { %v758_v62 = vadd.f32 %v757_v59, %v667_v60  ;;  %v1370_v63 = vpop.f32.mrb[1].mxu0 }
 0x33b   : > { %v753_v0 = vpop.f32.mrb[0].mxu1 }
 0x33c   : > { %760 = vst.msk [vmem:[#allocation2] sm:$0x1] %vm759_vm4, %v758_v62  ;;  %v762_v1 = vadd.f32 %v761_v61, %v753_v0  ;;  %v1405_v2 = vpop.f32.mrb[1].mxu1 }
 0x33e   : > { %763 = vst.msk [vmem:[#allocation3] sm:$0x1] %vm759_vm4, %v762_v1 }
 0x33f PF: > { %p1119_p2 = scmp.ne.s32.totalorder %s1852_s5, 1 }
 0x340   : > { %p1120_p3 = scmp.ne.s32.totalorder (!%p1119_p2), %s1848_s29, 0 }
 0x341   : > { %767 = sbr.rel (%p1119_p2) target bundleno = 1164 (0x48c), region = 60 }
 0x348   : > { %771 = sbr.rel (%p1120_p3) target bundleno = 871 (0x367), region = 64  ;;  %v772_v3 = vld [vmem:[#allocation4] sm:$0x1] (!%p1120_p3)  ;;  %v773_v4 = vld [vmem:[#allocation2] sm:$0x1] (!%p1120_p3)  ;;  %vm787_vm5 = vcmask (!%p1120_p3), 516096  }
 0x349   : > { %v775_v5 = vmul.f32 (!%p1120_p3), 56.0, %v772_v3  ;;  %v774_v6 = vld [vmem:[#allocation3] sm:$0x1] (!%p1120_p3)  ;;  %v783_v15 = vld [vmem:[%s2445_s2] sm:$0x1] (!%p1120_p3) }
 0x34a   : > { %v789_v19 = vld [vmem:[%s2446_s3] sm:$0x1] (!%p1120_p3) }
 0x34b   : > { %v776_v7 = vadd.f32 (!%p1120_p3), %v775_v5, %v773_v4  ;;  %v777_v8 = vmul.f32 (!%p1120_p3), %v775_v5, %v772_v3 }
 0x34d   : > { %v778_v9 = vsub.f32 (!%p1120_p3), %v774_v6, %v777_v8  ;;  %v779_v10 = vmul.f32 (!%p1120_p3), 0.005, %v776_v7 }
 0x34f   : > { %v780_v11 = vmul.f32 0.005, %v778_v9  ;;  %v781_v12 = vmul.f32 %v779_v10, %v779_v10  ;;  %v790_v16 = vadd.f32 %v779_v10, %v772_v3 }
 0x351   : > { %v782_v13 = vsub.f32 %v780_v11, %v781_v12 }
 0x353   : > { %v784_v14 = vadd.f32 1e-05, %v782_v13 }
 0x355   : > { %1709 = vrsqrt.f32 %v784_v14 }
 0x35f   : > { %v1710_v17 = vpop.eup %1709 }
 0x360   : > { %v786_v18 = vmul.f32 %v1710_v17, %v783_v15 }
 0x362   : > { %788 = vst.msk [vmem:[#allocation5] sm:$0x1] %vm787_vm5, %v786_v18  ;;  %v791_v20 = vmul.f32 %v790_v16, %v786_v18 }
 0x364   : > { %v792_v21 = vsub.f32 %v789_v19, %v791_v20 }
 0x366   : > { %793 = vst.msk [vmem:[#allocation6] sm:$0x1] %vm787_vm5, %v792_v21 }
 0x367 PF: > { %s1121_s10 = sshll.u32 %s1848_s29, 7  ;;  %v1877_v23 = vmov 0.0|0.0   ;;  %vm1878_vm6 = vmmov 0   ;;  %v1879_v27 = vmov 0.0   ;;  %v1880_v28 = vmov 0  }
 0x368   : > { %1545 = vmatprep.subr.bf16.mxu0 %v1877_v23  ;;  %s2294_s26 = scalar_lea.vmem [#allocation7], %s1121_s10  ;;  %1438 = vmatprep.mubr.msk.f32.mxu0 %vm1878_vm6, %v1879_v27  ;;  %vm875_vm7 = vcmask 523264   ;;  %v997_v41 = vld [vmem:[#allocation8] sm:$0x1] }
 0x369   : > { %v2291_v22 = vld [vmem:[#allocation5] ss:$0 sm:$0xff]  ;;  %v797_v25 = vld [vmem:[%s2294_s26 + $0x8] sm:$0xff]  ;;  %1711 = vset.pattern.permute.xlu0 %v1880_v28  ;;  %v798_v31 = vld [vmem:[%s2294_s26 + $0x10] sm:$0xff] }
 0x36a   : > { %v796_v24 = vld [vmem:[%s2294_s26] sm:$0xff]  ;;  %v820_v30 = vmul.f32 %v2291_v22, %v797_v25  ;;  %v799_v32 = vld [vmem:[%s2294_s26 + $0x18] sm:$0xff]  ;;  %v821_v33 = vmul.f32 %v2291_v22, %v798_v31  ;;  %vm2312_vm8 = vmpackc.low %vm875_vm7, %vm875_vm7  ;;  %1000 = vperm.xlu0 %1711, %v997_v41  }
 0x36b   : > { %v819_v29 = vmul.f32 %v2291_v22, %v796_v24  ;;  %v822_v34 = vmul.f32 %v2291_v22, %v799_v32  ;;  %v800_v43 = vld [vmem:[%s2294_s26 + $0x20] sm:$0xff]  ;;  %v801_v44 = vld [vmem:[%s2294_s26 + $0x28] sm:$0xff]  ;;  %v802_v52 = vld [vmem:[%s2294_s26 + $0x30] sm:$0xff] }
 0x36c   : > { %v823_v48 = vmul.f32 %v2291_v22, %v800_v43  ;;  %v824_v49 = vmul.f32 %v2291_v22, %v801_v44  ;;  %v803_v55 = vld [vmem:[%s2294_s26 + $0x38] sm:$0xff]  ;;  %v825_v58 = vmul.f32 %v2291_v22, %v802_v52  ;;  %v804_v62 = vld [vmem:[%s2294_s26 + $0x40] sm:$0xff]  ;;  %v805_v63 = vld [vmem:[%s2294_s26 + $0x48] sm:$0xff] }
 0x36d   : > { %v2298_v26 = vld [vmem:[#allocation6] ss:$0 sm:$0xff]  ;;  %v826_v54 = vmul.f32 %v2291_v22, %v803_v55  ;;  %v827_v2 = vmul.f32 %v2291_v22, %v804_v62  ;;  %v828_v3 = vmul.f32 %v2291_v22, %v805_v63  ;;  %v806_v7 = vld [vmem:[%s2294_s26 + $0x50] sm:$0xff]  ;;  %v807_v8 = vld [vmem:[%s2294_s26 + $0x58] sm:$0xff] }
 0x36e   : > { %v842_v35 = vadd.f32 %v2298_v26, %v819_v29  ;;  %v843_v36 = vadd.f32 %v2298_v26, %v820_v30  ;;  %v844_v39 = vadd.f32 %v2298_v26, %v821_v33  ;;  %v845_v40 = vadd.f32 %v2298_v26, %v822_v34  ;;  %v808_v16 = vld [vmem:[%s2294_s26 + $0x60] sm:$0xff]  ;;  %v809_v17 = vld [vmem:[%s2294_s26 + $0x68] sm:$0xff]  ;;  %v810_v28 = vld [vmem:[%s2294_s26 + $0x70] sm:$0xff] }
 0x36f   : > { %v846_v53 = vadd.f32 %v2298_v26, %v823_v48  ;;  %v847_v50 = vadd.f32 %v2298_v26, %v824_v49  ;;  %v848_v60 = vadd.f32 %v2298_v26, %v825_v58  ;;  %v849_v61 = vadd.f32 %v2298_v26, %v826_v54  ;;  %v811_v29 = vld [vmem:[%s2294_s26 + $0x78] sm:$0xff] }
 0x370   : > { %v858_v37 = vmax.f32 %v842_v35, 0.0  ;;  %v859_v38 = vmax.f32 %v843_v36, 0.0  ;;  %v860_v46 = vmax.f32 %v844_v39, 0.0  ;;  %v861_v47 = vmax.f32 %v845_v40, 0.0 }
 0x371   : > { %v862_v57 = vmax.f32 %v846_v53, 0.0  ;;  %v863_v56 = vmax.f32 %v847_v50, 0.0  ;;  %v864_v0 = vmax.f32 %v848_v60, 0.0  ;;  %v865_v1 = vmax.f32 %v849_v61, 0.0 }
 0x372   : > { %v1546_v45 = vpack.c.bf16 %v859_v38, %v858_v37  ;;  %v1550_v51 = vpack.c.bf16 %v861_v47, %v860_v46  ;;  %v850_v5 = vadd.f32 %v2298_v26, %v827_v2  ;;  %v851_v6 = vadd.f32 %v2298_v26, %v828_v3 }
 0x373   : > { %v1554_v59 = vpack.c.bf16 %v863_v56, %v862_v57  ;;  %v1558_v4 = vpack.c.bf16 %v865_v1, %v864_v0  ;;  %v829_v11 = vmul.f32 %v2291_v22, %v806_v7  ;;  %v830_v12 = vmul.f32 %v2291_v22, %v807_v8 }
 0x374   : > { %1548 = vmatpush3.bf16.xpose.msk.msra.mxu0 %vm2312_vm8, %v1546_v45  ;;  %v866_v9 = vmax.f32 %v850_v5, 0.0  ;;  %v867_v10 = vmax.f32 %v851_v6, 0.0  ;;  %v831_v20 = vmul.f32 %v2291_v22, %v808_v16  ;;  %v832_v21 = vmul.f32 %v2291_v22, %v809_v17 }
 0x375   : > { %1549 = vmatprep.subr.bf16.mxu0 %v1877_v23  ;;  %v852_v14 = vadd.f32 %v2298_v26, %v829_v11  ;;  %v853_v15 = vadd.f32 %v2298_v26, %v830_v12  ;;  %v833_v32 = vmul.f32 %v2291_v22, %v810_v28  ;;  %v834_v33 = vmul.f32 %v2291_v22, %v811_v29  ;;  %v874_v22 = vld [vmem:[%s2447_s4] sm:$0xff] }
 0x376   : > { %v1562_v13 = vpack.c.bf16 %v867_v10, %v866_v9  ;;  %v854_v25 = vadd.f32 %v2298_v26, %v831_v20  ;;  %v855_v27 = vadd.f32 %v2298_v26, %v832_v21  ;;  %v1003_v40 = vlaneseq }
 0x377   : > { %v868_v18 = vmax.f32 %v852_v14, 0.0  ;;  %v869_v19 = vmax.f32 %v853_v15, 0.0  ;;  %v856_v35 = vadd.f32 %v2298_v26, %v833_v32  ;;  %v857_v36 = vadd.f32 %v2298_v26, %v834_v33 }
 0x378   : > { %v870_v30 = vmax.f32 %v854_v25, 0.0  ;;  %v871_v31 = vmax.f32 %v855_v27, 0.0  ;;  %v1004_v26 = vshrl.u32 %v1003_v40, 7 }
 0x379   : > { %v1566_v24 = vpack.c.bf16 %v869_v19, %v868_v18  ;;  %v872_v37 = vmax.f32 %v856_v35, 0.0  ;;  %v873_v38 = vmax.f32 %v857_v36, 0.0 }
 0x37a   : > { %v1570_v34 = vpack.c.bf16 %v871_v31, %v870_v30  ;;  %v1005_v41 = vsub.s32 0, %v1004_v26 }
 0x37b   : > { %v1574_v39 = vpack.c.bf16 %v873_v38, %v872_v37 }
 0x37c   : > { %1552 = vmatpush3.bf16.xpose.msk.msra.mxu0 %vm2312_vm8, %v1550_v51 }
 0x37d   : > { %1553 = vmatprep.subr.bf16.mxu0 %v1877_v23 }
 0x384   : > { %1556 = vmatpush3.bf16.xpose.msk.msra.mxu0 %vm2312_vm8, %v1554_v59 }
 0x385   : > { %1557 = vmatprep.subr.bf16.mxu0 %v1877_v23 }
 0x38c   : > { %1560 = vmatpush3.bf16.xpose.msk.msra.mxu0 %vm2312_vm8, %v1558_v4 }
 0x38d   : > { %1561 = vmatprep.subr.bf16.mxu0 %v1877_v23 }
 0x394   : > { %1564 = vmatpush3.bf16.xpose.msk.msra.mxu0 %vm2312_vm8, %v1562_v13 }
 0x395   : > { %1565 = vmatprep.subr.bf16.mxu0 %v1877_v23 }
 0x39c   : > { %1568 = vmatpush3.bf16.xpose.msk.msra.mxu0 %vm2312_vm8, %v1566_v24 }
 0x39d   : > { %1569 = vmatprep.subr.bf16.mxu0 %v1877_v23 }
 0x3a4   : > { %1572 = vmatpush3.bf16.xpose.msk.msra.mxu0 %vm2312_vm8, %v1570_v34 }
 0x3a5   : > { %1573 = vmatprep.subr.bf16.mxu0 %v1877_v23 }
 0x3ac   : > { %1576 = vmatpush3.bf16.xpose.msk.msra.mxu0 %vm2312_vm8, %v1574_v39 }
 0x3b3   : > { %1439 = vmatmul.mubr.msk.f32.vlgmr.msra.gmra.mrb[0].mxu0 %vm875_vm7, %v874_v22 }
 0x3e9   : > { %v1001_v43 = vpop.permute.xlu0 %1000 }
 0x3ea   : > { %v1006_v44 = vrot.slane %v1001_v43, %v1005_v41 }
 0x486   : > { %v993_v45 = vpop.f32.mrb[0].mxu0 }
 0x487   : > { %v1007_v46 = vadd.f32 %v1006_v44, %v993_v45  ;;  %v1440_v47 = vpop.f32.mrb[1].mxu0 }
 0x489   : > { %v1008_v48 = vmax.f32 %v1007_v46, 0.0 }
 0x48b   : > { %1009 = vst [vmem:[%s2085_s13] sm:$0x1] %v1008_v48 }
 0x48c PF: > { %s1017_s16 = smul.u32 %s1848_s29, %s1852_s5  ;;  %s1024_s20 = sshll.u32 %s2085_s13, 4  ;;  %s2383_s20 = int_to_ptr.vmem [resolvable:$true] %s1024_s20 }
 0x48d   : > { %s2467_s14 = sld [smem:[#allocation18_spill]]  ;;  %s1011_s10 = scalar_lea.sflag [#allocation11], %s292_s30 }
 0x48e   : > { %s1141_s17 = sshll.u32 %s1017_s16, 4  ;;  %s1742_s26 = scalar_lea.vmem %s2383_s20, 16 }
 0x48f   : > { %p1743_p0 = scmp.ne.s32.totalorder %s2383_s20, %s1742_s26  ;;  %p2468_p1 = scmp.ne.s32.totalorder %s2461_s6, 0 }
 0x490   : > { %s1881_s11 = smov [#allocation12]  }
 0x491   : > { %p1744_p4 = pnand %p1743_p0, %p2468_p1  ;;  %s1746_s29 = sshll.u32 %s1881_s11, 4  ;;  %s1747_s29 = int_to_ptr.vmem [resolvable:$false] %s1746_s29 }
 0x492   : > { %s1748_s5 = scalar_lea.vmem %s1747_s29, 32  ;;  %p1749_p6 = scmp.lt.s32.totalorder %s2383_s20, %s1747_s29 }
 0x493   : > { %s1022_s21 = scalar_lea.hbm %s2467_s14, %s1141_s17  ;;  %p1745_p8 = pneg %p1744_p4 }
 0x494   : > { %p1750_p10 = scmp.lt.s32.totalorder %s1748_s5, %s1742_s26 }
 0x496   : > { %p1751_p11 = por %p1750_p10, %p1749_p6 }
 0x498   : > { %p1752_p5 = pnand %p1751_p11, %p1745_p8 }
 0x49a   : > { %1755 = shalt.err (!%p1752_p5)
}
 0x49b   : > { %s1756_s13 = scalar_lea.hbm %s1022_s21, 16  ;;  %s1760_s16 = scalar_lea.hbm %s2467_s14, 32 }
 0x49c   : > { %p1757_p9 = scmp.ne.s32.totalorder %s1022_s21, %s1756_s13  ;;  %p1761_p7 = scmp.lt.u32.totalorder %s1022_s21, %s2467_s14 }
 0x49d   : > { %p1762_p2 = scmp.lt.u32.totalorder %s1760_s16, %s1756_s13  ;;  %p1764_p0 = scmp.lt.u32.totalorder %s1756_s13, %s1022_s21 }
 0x49e   : > { %p1758_p13 = pnand %p1757_p9, %p2468_p1 }
 0x49f   : > { %p1763_p3 = por %p1762_p2, %p1761_p7 }
 0x4a0   : > { %p1759_p12 = pneg %p1758_p13 }
 0x4a1   : > { %p1765_p4 = por %p1764_p0, %p1763_p3 }
 0x4a3   : > { %p1766_p8 = pnand %p1765_p4, %p1759_p12 }
 0x4a5   : > { %1769 = shalt.err (!%p1766_p8)
}
 0x4a6   : > { %1595 = dma.vmem_to_hbm [thread:$0]  (%p2468_p1), %s2383_s20, 16, %s1022_s21, %s1011_s10  }
 0x4a7 PF: > { %p1606_p6 = scmp.ge.s32.totalorder %s1864_s8, 2  ;;  %s1036_s18 = sand.u32 1, %s1824_s23  }
 0x4a8   : > { %p2469_p10 = scmp.ne.s32.totalorder %s2463_s9, 0  ;;  %s1037_s26 = scalar_lea.sflag [#allocation11], %s1036_s18 }
 0x4aa   : > { %p1602_p11 = pnand %p1606_p6, %p2469_p10 }
 0x4ac   : > { %1819 = dma.done.wait (!%p1602_p11), %s1037_s26, 16  }
 0x4ad   : > { %1821 = vsyncadd (!%p1602_p11), %s1037_s26, 4294967280  ;;  %s24_s8 = sadd.s32 1, %s1864_s8   ;;  %s2470_s29 = sld [smem:[#allocation15_spill]] }
 0x4ae   : > { %p21_p5 = scmp.ge.s32.totalorder %s24_s8, 6   ;;  %s2471_s5 = sld [smem:[#allocation16_spill]] }
 0x4af   : > { %s2472_s30 = sld [smem:[#allocation17_spill]]  ;;  %s2473_s23 = smov %s1828_s24 }
 0x4b0   : > { %s2474_s24 = smov %s1832_s25  ;;  %s2475_s25 = smov %s2021_s19 }
 0x4b1   : > { %s2476_s26 = smov %s1840_s27  ;;  %s2477_s27 = smov %s1844_s28 }
 0x4b2   : > { %s2478_s28 = smov %s2018_s7  ;;  %s2479_s7 = smov %s2485_s12 }
 0x4b3   :  { %23 = sbr.rel (!%p21_p5) target bundleno = 12 (0xc), region = 107 }
 0x4ba   :  { %1041 = vsyncpa [#allocation10], 1 }
 0x4bb   :  { %1043 = vsyncpa [#allocation10 + $0x1], 1 }
 0x4bc   :  { %1044 = vsyncpa [#allocation11], 1 }
 0x4bd   :  { %1046 = vsyncpa [#allocation11 + $0x1], 1 }

</bundles_post_ra>
